<compile_context>
chip_gen: v6e
topology: v6e:2x2x1
jax: 0.10.0
libtpu: 0.0.40
codegen_flags: <defaults>
</compile_context>

<pallas_src>
import functools
import math

import jax
import jax.numpy as jnp
from jax.experimental import pallas as pl
from jax.experimental.pallas import tpu as pltpu

MODEL_DIM = 128
MAX_STEPS = 1000
LN_EPS = 1e-5  # torch.nn.LayerNorm default eps

# Rows of the packed (6, 2D) vector-parameter slab (D-wide rows zero-padded).
_ROW_FREQ = 0    # freq_bands duplicated to D lanes: [f_0..f_{D/2-1}, f_0..f_{D/2-1}]
_ROW_PHASE = 1   # phase offset: [0]*D/2 ++ [pi/2]*D/2  (cos(x) = sin(x + pi/2))
_ROW_B1 = 2      # b1, full 2D lanes
_ROW_B2 = 3
_ROW_GAMMA = 4
_ROW_BETA = 5
_NUM_VEC_ROWS = 6


def _gelu_tanh(x):
    # tanh-approximate GELU; tanh lowers to the EUP slot (free next to VPU work).
    c = math.sqrt(2.0 / math.pi)
    return 0.5 * x * (1.0 + jnp.tanh(c * (x + 0.044715 * x * x * x)))


def _tse_kernel(t_ref, vec_ref, w1_ref, w2_ref, out_ref, *, bf16_gelu):
    # t_ref: (TB, 1) f32     vec_ref: (6, 2D) f32
    # w1_ref: (D, 2D) bf16   w2_ref: (2D, D) bf16   out_ref: (TB, D) f32/bf16
    d = out_ref.shape[1]

    # --- fused sinusoid embedding: one sin pass, cos via +pi/2 phase offset ---
    t = t_ref[...]                                           # (TB, 1) f32
    freq2 = vec_ref[_ROW_FREQ:_ROW_FREQ + 1, :d]             # (1, D) duplicated freqs
    phase_off = vec_ref[_ROW_PHASE:_ROW_PHASE + 1, :d]       # (1, D) 0 | pi/2
    emb = jnp.sin(t * freq2 + phase_off)                     # (TB, D) f32

    # --- packed vector params ---
    b1 = vec_ref[_ROW_B1:_ROW_B1 + 1, :]                     # (1, 2D)
    b2 = vec_ref[_ROW_B2:_ROW_B2 + 1, :d]                    # (1, D)
    gamma = vec_ref[_ROW_GAMMA:_ROW_GAMMA + 1, :d]           # (1, D)
    beta = vec_ref[_ROW_BETA:_ROW_BETA + 1, :d]              # (1, D)

    # --- proj1 + GELU (bf16 MXU operands, f32 accumulate) ---
    h = jnp.dot(emb.astype(jnp.bfloat16), w1_ref[...],
                preferred_element_type=jnp.float32)          # (TB, 2D) f32
    if bf16_gelu:
        # v6e/v7x: bf16-native VPU/EUP -> bias-add + GELU in bf16 (half the VALU
        # element ops); h is truncated to bf16 for the second matmul anyway.
        h = _gelu_tanh(h.astype(jnp.bfloat16) + b1.astype(jnp.bfloat16))
    else:
        # v5e: no bf16 VPU/EUP -> keep elementwise math in f32.
        h = _gelu_tanh(h + b1).astype(jnp.bfloat16)

    # --- proj2 ---
    y = jnp.dot(h, w2_ref[...], preferred_element_type=jnp.float32) + b2  # (TB, D) f32

    # --- LayerNorm over features, single reduction pass ---
    inv_d = 1.0 / d
    s = jnp.sum(y, axis=-1, keepdims=True)
    s2 = jnp.sum(y * y, axis=-1, keepdims=True)
    mu = s * inv_d
    var = jnp.maximum(s2 * inv_d - mu * mu, 0.0)
    y_hat = (y - mu) * jax.lax.rsqrt(var + LN_EPS)
    out_ref[...] = (y_hat * gamma + beta).astype(out_ref.dtype)


def init_params(key, model_dim=MODEL_DIM):
    """Deterministic, PyTorch-style (uniform +-1/sqrt(fan_in)) init, all f32."""
    half = model_dim // 2
    exponent = -math.log(10000.0) / (half - 1)
    freq_bands = jnp.exp(jnp.arange(half, dtype=jnp.float32) * exponent)

    k1, k2, k3, k4 = jax.random.split(key, 4)

    def linear(kw, kb, fan_in, fan_out):
        bound = 1.0 / math.sqrt(fan_in)
        w = jax.random.uniform(kw, (fan_in, fan_out), jnp.float32, -bound, bound)
        b = jax.random.uniform(kb, (fan_out,), jnp.float32, -bound, bound)
        return w, b

    w1, b1 = linear(k1, k2, model_dim, model_dim * 2)
    w2, b2 = linear(k3, k4, model_dim * 2, model_dim)
    return dict(
        freq_bands=freq_bands,
        w1=w1, b1=b1, w2=w2, b2=b2,
        gamma=jnp.ones((model_dim,), jnp.float32),
        beta=jnp.zeros((model_dim,), jnp.float32),
    )


def pack_params(params):
    """Pack the 7 small operands into 3 kernel operands (vec slab + bf16 weights)."""
    d = params["w2"].shape[-1]
    half = d // 2
    freq2 = jnp.concatenate([params["freq_bands"], params["freq_bands"]], axis=0)   # (D,)
    phase_off = jnp.concatenate(
        [jnp.zeros((half,), jnp.float32),
         jnp.full((half,), jnp.pi / 2.0, jnp.float32)], axis=0)                     # (D,)

    def pad2d(v):  # pad a (D,) row out to (2D,) lanes
        return jnp.concatenate([v.astype(jnp.float32), jnp.zeros((d,), jnp.float32)])

    vec = jnp.stack(
        [pad2d(freq2), pad2d(phase_off),
         params["b1"].astype(jnp.float32),                  # full (2D,) row
         pad2d(params["b2"]), pad2d(params["gamma"]), pad2d(params["beta"])],
        axis=0)                                             # (6, 2D) f32
    return dict(
        vec=vec,
        w1=params["w1"].astype(jnp.bfloat16),               # (D, 2D) bf16
        w2=params["w2"].astype(jnp.bfloat16),               # (2D, D) bf16
    )


def _default_bf16_gelu():
    """bf16 elementwise path only on bf16-native VPU/EUP chips (v6e / v7x)."""
    try:
        kind = jax.devices()[0].device_kind.lower()
    except Exception:  # no device info -> assume modern chip
        return True
    return not any(tag in kind for tag in ("v2", "v3", "v4", "v5"))


def _round_up_8(n):
    return max(8, ((n + 7) // 8) * 8)


def _pick_tile_b(batch, max_tile):
    """Biggest multiple-of-8 tile <= max_tile; Pallas masks the ragged last block.

    For batch >= 256 keep at least 2 grid steps of >=128 rows each so
    dimension_semantics=("parallel",) can shard across v7x's two TensorCores
    (harmless ~0.35 us extra step on single-TC v5e/v6e)."""
    tile = min(_round_up_8(batch), max(8, (max_tile // 8) * 8))
    if batch >= 256:
        tile = min(tile, _round_up_8(pl.cdiv(batch, 2)))
    return tile


def timestep_embedding(timesteps, packed, *, max_tile_b=2048,
                       out_dtype=jnp.bfloat16, bf16_gelu=None):
    """Fused sinusoid + MLP + LayerNorm.  Pass out_dtype=jnp.float32 for strict
    dtype parity with the PyTorch module."""
    vec, w1, w2 = packed["vec"], packed["w1"], packed["w2"]
    d = w2.shape[-1]
    batch = timesteps.shape[0]
    # Keep timesteps as a (B, 1) f32 column: in-kernel lane broadcast is cheap,
    # pre-broadcasting to (B, D) would multiply input HBM traffic by D.
    t2d = timesteps.astype(jnp.float32).reshape(batch, 1)

    if bf16_gelu is None:
        bf16_gelu = _default_bf16_gelu()

    tile_b = _pick_tile_b(batch, max_tile_b)
    grid = (pl.cdiv(batch, tile_b),)

    out_bytes = batch * d * jnp.dtype(out_dtype).itemsize
    cost = pl.CostEstimate(
        flops=2 * batch * d * (2 * d) * 2,            # two matmuls
        transcendentals=batch * 3 * d,                # sin (D) + tanh-GELU (2D) per row
        bytes_accessed=(t2d.nbytes + vec.nbytes + w1.nbytes + w2.nbytes + out_bytes),
    )

    kernel = functools.partial(_tse_kernel, bf16_gelu=bool(bf16_gelu))

    return pl.pallas_call(
        kernel,
        out_shape=jax.ShapeDtypeStruct((batch, d), out_dtype),
        grid=grid,
        in_specs=[
            pl.BlockSpec((tile_b, 1), lambda i: (i, 0)),              # timesteps column
            pl.BlockSpec((_NUM_VEC_ROWS, 2 * d), lambda i: (0, 0)),   # resident vec slab
            pl.BlockSpec((d, 2 * d), lambda i: (0, 0)),               # resident w1 (bf16)
            pl.BlockSpec((2 * d, d), lambda i: (0, 0)),               # resident w2 (bf16)
        ],
        out_specs=pl.BlockSpec((tile_b, d), lambda i: (i, 0)),
        compiler_params=pltpu.CompilerParams(dimension_semantics=("parallel",)),
        cost_estimate=cost,
    )(t2d, vec, w1, w2)


def timestep_embedding_ref(timesteps, params, *, bf16_gelu):
    """Pure-JAX reference of the module forward, mirroring the kernel's precision
    policy (bf16 MXU operands, f32 accumulate, optional bf16 GELU)."""
    t = timesteps.astype(jnp.float32)[:, None]
    t_freq = t * params["freq_bands"][None, :]
    emb = jnp.concatenate([jnp.sin(t_freq), jnp.cos(t_freq)], axis=-1)
    h = jnp.dot(emb.astype(jnp.bfloat16), params["w1"].astype(jnp.bfloat16),
                preferred_element_type=jnp.float32)
    if bf16_gelu:
        h = _gelu_tanh(h.astype(jnp.bfloat16) + params["b1"].astype(jnp.bfloat16))
    else:
        h = _gelu_tanh(h + params["b1"]).astype(jnp.bfloat16)
    y = jnp.dot(h, params["w2"].astype(jnp.bfloat16),
                preferred_element_type=jnp.float32) + params["b2"]
    mu = y.mean(axis=-1, keepdims=True)
    var = ((y - mu) ** 2).mean(axis=-1, keepdims=True)
    return (y - mu) * jax.lax.rsqrt(var + LN_EPS) * params["gamma"] + params["beta"]


if __name__ == "__main__":
    key = jax.random.PRNGKey(0)
    pkey, tkey = jax.random.split(key)
    params = init_params(pkey, MODEL_DIM)
    packed = pack_params(params)

    batch = 8
    timesteps = jax.random.randint(tkey, (batch,), 0, MAX_STEPS, dtype=jnp.int32)

    bf16_gelu = _default_bf16_gelu()
    ref = timestep_embedding_ref(timesteps, params, bf16_gelu=bf16_gelu)

    # f32 output path (strict dtype parity with the PyTorch module).
    out_f32 = jax.block_until_ready(
        timestep_embedding(timesteps, packed, out_dtype=jnp.float32, bf16_gelu=bf16_gelu))
    assert out_f32.shape == (batch, MODEL_DIM) and out_f32.dtype == jnp.float32
    err_f32 = float(jnp.max(jnp.abs(out_f32 - ref)))
    assert jnp.allclose(out_f32, ref, atol=1e-2, rtol=1e-2), err_f32

    # Default bf16 output path (half the HBM writeback).
    out_bf16 = jax.block_until_ready(
        timestep_embedding(timesteps, packed, bf16_gelu=bf16_gelu))
    assert out_bf16.shape == (batch, MODEL_DIM) and out_bf16.dtype == jnp.bfloat16
    err_bf16 = float(jnp.max(jnp.abs(out_bf16.astype(jnp.float32) - ref)))
    assert jnp.allclose(out_bf16.astype(jnp.float32), ref, atol=4e-2, rtol=4e-2), err_bf16

    print("KERNEL_OK")
</pallas_src>

<mosaic_0001>
module attributes {stable_mosaic.version = 11 : i64} {
  func.func @_tse_kernel(%arg0: i32, %arg1: memref<8x1xf32, #tpu.memory_space<vmem>>, %arg2: memref<6x256xf32, #tpu.memory_space<vmem>>, %arg3: memref<128x256xbf16, #tpu.memory_space<vmem>>, %arg4: memref<256x128xbf16, #tpu.memory_space<vmem>>, %arg5: memref<8x128xf32, #tpu.memory_space<vmem>>) attributes {dimension_semantics = [#tpu.dimension_semantics<parallel>], iteration_bounds = array<i64: 1>, scalar_prefetch = 0 : i64, scratch_operands = 0 : i64, tpu.core_type = #tpu.core_type<tc>, window_params = [{transform_indices = @transform_0, window_bounds = array<i64: 8, 1>}, {pipeline_mode = #tpu.pipeline_mode<synchronous>, transform_indices = @transform_1, window_bounds = array<i64: 6, 256>}, {pipeline_mode = #tpu.pipeline_mode<synchronous>, transform_indices = @transform_2, window_bounds = array<i64: 128, 256>}, {pipeline_mode = #tpu.pipeline_mode<synchronous>, transform_indices = @transform_3, window_bounds = array<i64: 256, 128>}, {transform_indices = @transform_4, window_bounds = array<i64: 8, 128>}]} {
    %c0 = arith.constant 0 : index
    %c0_0 = arith.constant 0 : index
    %0 = vector.load %arg1[%c0, %c0_0] : memref<8x1xf32, #tpu.memory_space<vmem>>, vector<8x1xf32>
    %c0_1 = arith.constant 0 : index
    %c0_2 = arith.constant 0 : index
    %1 = vector.load %arg2[%c0_1, %c0_2] : memref<6x256xf32, #tpu.memory_space<vmem>>, vector<1x128xf32>
    %c1 = arith.constant 1 : index
    %c0_3 = arith.constant 0 : index
    %2 = vector.load %arg2[%c1, %c0_3] : memref<6x256xf32, #tpu.memory_space<vmem>>, vector<1x128xf32>
    %3 = vector.broadcast %0 : vector<8x1xf32> to vector<8x128xf32>
    %4 = vector.broadcast %1 : vector<1x128xf32> to vector<8x128xf32>
    %5 = arith.mulf %3, %4 : vector<8x128xf32>
    %6 = vector.broadcast %2 : vector<1x128xf32> to vector<8x128xf32>
    %7 = arith.addf %5, %6 : vector<8x128xf32>
    %8 = math.sin %7 : vector<8x128xf32>
    %c2 = arith.constant 2 : index
    %c0_4 = arith.constant 0 : index
    %9 = vector.load %arg2[%c2, %c0_4] : memref<6x256xf32, #tpu.memory_space<vmem>>, vector<1x256xf32>
    %c3 = arith.constant 3 : index
    %c0_5 = arith.constant 0 : index
    %10 = vector.load %arg2[%c3, %c0_5] : memref<6x256xf32, #tpu.memory_space<vmem>>, vector<1x128xf32>
    %c4 = arith.constant 4 : index
    %c0_6 = arith.constant 0 : index
    %11 = vector.load %arg2[%c4, %c0_6] : memref<6x256xf32, #tpu.memory_space<vmem>>, vector<1x128xf32>
    %c5 = arith.constant 5 : index
    %c0_7 = arith.constant 0 : index
    %12 = vector.load %arg2[%c5, %c0_7] : memref<6x256xf32, #tpu.memory_space<vmem>>, vector<1x128xf32>
    %13 = arith.truncf %8 : vector<8x128xf32> to vector<8x128xbf16>
    %c0_8 = arith.constant 0 : index
    %c0_9 = arith.constant 0 : index
    %14 = vector.load %arg3[%c0_8, %c0_9] : memref<128x256xbf16, #tpu.memory_space<vmem>>, vector<128x256xbf16>
    %cst = arith.constant dense<0.000000e+00> : vector<8x256xf32>
    %15 = tpu.matmul %13, %14, %cst {dimension_numbers = #tpu.dot_dimension_numbers<[1], [0], [0], [1], [0, 0, 1, 1], [], []>} : vector<8x128xbf16>, vector<128x256xbf16>, vector<8x256xf32> -> vector<8x256xf32>
    %16 = arith.truncf %15 : vector<8x256xf32> to vector<8x256xbf16>
    %17 = arith.truncf %9 : vector<1x256xf32> to vector<1x256xbf16>
    %18 = vector.broadcast %17 : vector<1x256xbf16> to vector<8x256xbf16>
    %19 = arith.addf %16, %18 : vector<8x256xbf16>
    %cst_10 = arith.constant 5.000000e-01 : bf16
    %20 = vector.broadcast %cst_10 : bf16 to vector<8x256xbf16>
    %21 = arith.mulf %20, %19 : vector<8x256xbf16>
    %cst_11 = arith.constant 4.467770e-02 : bf16
    %22 = vector.broadcast %cst_11 : bf16 to vector<8x256xbf16>
    %23 = arith.mulf %22, %19 : vector<8x256xbf16>
    %24 = arith.mulf %23, %19 : vector<8x256xbf16>
    %25 = arith.mulf %24, %19 : vector<8x256xbf16>
    %26 = arith.addf %19, %25 : vector<8x256xbf16>
    %cst_12 = arith.constant 7.968750e-01 : bf16
    %27 = vector.broadcast %cst_12 : bf16 to vector<8x256xbf16>
    %28 = arith.mulf %27, %26 : vector<8x256xbf16>
    %29 = math.tanh %28 : vector<8x256xbf16>
    %cst_13 = arith.constant 1.000000e+00 : bf16
    %30 = vector.broadcast %cst_13 : bf16 to vector<8x256xbf16>
    %31 = arith.addf %30, %29 : vector<8x256xbf16>
    %32 = arith.mulf %21, %31 : vector<8x256xbf16>
    %c0_14 = arith.constant 0 : index
    %c0_15 = arith.constant 0 : index
    %33 = vector.load %arg4[%c0_14, %c0_15] : memref<256x128xbf16, #tpu.memory_space<vmem>>, vector<256x128xbf16>
    %cst_16 = arith.constant dense<0.000000e+00> : vector<8x128xf32>
    %34 = tpu.matmul %32, %33, %cst_16 {dimension_numbers = #tpu.dot_dimension_numbers<[1], [0], [0], [1], [0, 0, 1, 1], [], []>} : vector<8x256xbf16>, vector<256x128xbf16>, vector<8x128xf32> -> vector<8x128xf32>
    %35 = vector.broadcast %10 : vector<1x128xf32> to vector<8x128xf32>
    %36 = arith.addf %34, %35 : vector<8x128xf32>
    %cst_17 = arith.constant dense<0.000000e+00> : vector<8xf32>
    %37 = vector.multi_reduction <add>, %36, %cst_17 [1] : vector<8x128xf32> to vector<8xf32>
    %38 = vector.shape_cast %37 : vector<8xf32> to vector<8x1xf32>
    %39 = arith.mulf %36, %36 : vector<8x128xf32>
    %cst_18 = arith.constant dense<0.000000e+00> : vector<8xf32>
    %40 = vector.multi_reduction <add>, %39, %cst_18 [1] : vector<8x128xf32> to vector<8xf32>
    %41 = vector.shape_cast %40 : vector<8xf32> to vector<8x1xf32>
    %cst_19 = arith.constant 7.812500e-03 : f32
    %42 = vector.broadcast %cst_19 : f32 to vector<8x1xf32>
    %43 = arith.mulf %38, %42 : vector<8x1xf32>
    %cst_20 = arith.constant 7.812500e-03 : f32
    %44 = vector.broadcast %cst_20 : f32 to vector<8x1xf32>
    %45 = arith.mulf %41, %44 : vector<8x1xf32>
    %46 = arith.mulf %43, %43 : vector<8x1xf32>
    %47 = arith.subf %45, %46 : vector<8x1xf32>
    %cst_21 = arith.constant 0.000000e+00 : f32
    %48 = vector.broadcast %cst_21 : f32 to vector<8x1xf32>
    %49 = arith.maximumf %47, %48 : vector<8x1xf32>
    %50 = vector.broadcast %43 : vector<8x1xf32> to vector<8x128xf32>
    %51 = arith.subf %36, %50 : vector<8x128xf32>
    %cst_22 = arith.constant 9.99999974E-6 : f32
    %52 = vector.broadcast %cst_22 : f32 to vector<8x1xf32>
    %53 = arith.addf %49, %52 : vector<8x1xf32>
    %54 = math.rsqrt %53 : vector<8x1xf32>
    %55 = vector.broadcast %54 : vector<8x1xf32> to vector<8x128xf32>
    %56 = arith.mulf %51, %55 : vector<8x128xf32>
    %57 = vector.broadcast %11 : vector<1x128xf32> to vector<8x128xf32>
    %58 = arith.mulf %56, %57 : vector<8x128xf32>
    %59 = vector.broadcast %12 : vector<1x128xf32> to vector<8x128xf32>
    %60 = arith.addf %58, %59 : vector<8x128xf32>
    %c0_23 = arith.constant 0 : index
    %c0_24 = arith.constant 0 : index
    %61 = vector.load %arg5[%c0_23, %c0_24] : memref<8x128xf32, #tpu.memory_space<vmem>>, vector<8x128xf32>
    tpu.vector_store %arg5[%c0_23, %c0_24], %60 {strides = array<i32>} : memref<8x128xf32, #tpu.memory_space<vmem>>, vector<8x128xf32>,
    return
  }
  func.func @transform_0(%arg0: i32) -> (i32, i32) {
    %c0_i32 = arith.constant 0 : i32
    %c0_i32_0 = arith.constant 0 : i32
    return %arg0, %c0_i32 : i32, i32
  }
  func.func @transform_1(%arg0: i32) -> (i32, i32) {
    %c0_i32 = arith.constant 0 : i32
    %c0_i32_0 = arith.constant 0 : i32
    %c0_i32_1 = arith.constant 0 : i32
    return %c0_i32, %c0_i32_0 : i32, i32
  }
  func.func @transform_2(%arg0: i32) -> (i32, i32) {
    %c0_i32 = arith.constant 0 : i32
    %c0_i32_0 = arith.constant 0 : i32
    %c0_i32_1 = arith.constant 0 : i32
    return %c0_i32, %c0_i32_0 : i32, i32
  }
  func.func @transform_3(%arg0: i32) -> (i32, i32) {
    %c0_i32 = arith.constant 0 : i32
    %c0_i32_0 = arith.constant 0 : i32
    %c0_i32_1 = arith.constant 0 : i32
    return %c0_i32, %c0_i32_0 : i32, i32
  }
  func.func @transform_4(%arg0: i32) -> (i32, i32) {
    %c0_i32 = arith.constant 0 : i32
    %c0_i32_0 = arith.constant 0 : i32
    return %arg0, %c0_i32 : i32, i32
  }
}

</mosaic_0001>

<bundles_post_ra>
// kernel: tpu_custom_call.1
= control target key start
LH: loop header
LB: loop body
LE: loop exit
PB: predicated region body
PF: predicated region fallthrough
CT: control target
= control target key end

     0   :  { %9 = vsyncpa [#allocation3], 0  ;;  %s859_s0 = inlined_call_operand.vmem [shape: f32[8,1], index: 0, kind: input, shape index: {}]   ;;  %s860_s1 = inlined_call_operand.hbm [shape: f32[6,256], index: 1, kind: input, shape index: {}]   ;;  %s861_s2 = inlined_call_operand.hbm [shape: bf16[128,256], index: 2, kind: input, shape index: {}]   ;;  %s862_s3 = inlined_call_operand.hbm [shape: bf16[256,128], index: 3, kind: input, shape index: {}]   ;;  %s863_s4 = inlined_call_operand.hbm [shape: f32[8,128], index: 4, kind: output, shape index: {}]  }
   0x1   :  { %10 = vsyncpa [#allocation6], 0 }
   0x2   :  { %11 = vsyncpa [#allocation4], 0  ;;  %s783_s15 = smov [#allocation5]  }
   0x3   :  { %s29_s16 = sshll.u32 %s783_s15, 4  ;;  %s30_s16 = int_to_ptr.vmem [resolvable:$true] %s29_s16 }
   0x4   :  { %s705_s17 = scalar_lea.vmem %s30_s16, 2048  ;;  %p710_p1 = scmp.lt.s32.totalorder %s30_s16, %s30_s16 }
   0x5   :  { %p706_p0 = scmp.ne.s32.totalorder %s30_s16, %s705_s17  ;;  %p711_p2 = scmp.lt.s32.totalorder %s705_s17, %s705_s17 }
   0x7   :  { %p712_p3 = por %p711_p2, %p710_p1 }
   0x9   :  { %p713_p4 = pnand %p712_p3, %p706_p0 }
   0xb   :  { %716 = shalt.err (!%p713_p4)
}
   0xc   :  { %s784_s18 = smov 128   ;;  %s785_s19 = smov 8  }
   0xd   :  { %35 = dma.hbm_to_vmem [thread:$0]  %s861_s2, 2048, %s30_s16, [#allocation6], %s784_s18, %s784_s18, %s785_s19  }
   0xe   :  { %s786_s22 = smov [#allocation2]   ;;  %s787_s24 = smov [#allocation7]  }
   0xf   :  { %s20_s23 = sshll.u32 %s786_s22, 4  ;;  %s41_s25 = sshll.u32 %s787_s24, 4  ;;  %s21_s23 = int_to_ptr.vmem [resolvable:$true] %s20_s23  ;;  %s42_s25 = int_to_ptr.vmem [resolvable:$true] %s41_s25 }
  0x10   :  { %s725_s26 = scalar_lea.vmem %s21_s23, 256  ;;  %p730_p6 = scmp.lt.s32.totalorder %s21_s23, %s21_s23 }
  0x11   :  { %p726_p5 = scmp.ne.s32.totalorder %s21_s23, %s725_s26  ;;  %p731_p7 = scmp.lt.s32.totalorder %s725_s26, %s725_s26 }
  0x13   :  { %p732_p8 = por %p731_p7, %p730_p6 }
  0x15   :  { %p733_p9 = pnand %p732_p8, %p726_p5 }
  0x17   :  { %736 = shalt.err (!%p733_p9)
}
  0x18   :  { %23 = dma.hbm_to_vmem [thread:$0]  %s860_s1, 256, %s21_s23, [#allocation3]  }
  0x19   :  { %s745_s29 = scalar_lea.vmem %s42_s25, 2048  ;;  %p750_p11 = scmp.lt.s32.totalorder %s42_s25, %s42_s25 }
  0x1a   :  { %p746_p10 = scmp.ne.s32.totalorder %s42_s25, %s745_s29  ;;  %p751_p12 = scmp.lt.s32.totalorder %s745_s29, %s745_s29 }
  0x1c   :  { %p752_p13 = por %p751_p12, %p750_p11 }
  0x1e   :  { %p753_p0 = pnand %p752_p13, %p746_p10 }
  0x20   :  { %756 = shalt.err (!%p753_p0)
}
  0x21   :  { %s788_s2 = smov 64   ;;  %s789_s30 = smov 4  }
  0x22   :  { %47 = dma.hbm_to_vmem [thread:$0]  %s862_s3, 2048, %s42_s25, [#allocation6], %s788_s2, %s788_s2, %s789_s30  }
  0x23   :  { %777 = dma.done.wait [#allocation3], 256  }
  0x24   :  { %778 = vsyncadd [#allocation3], 4294967040 }
  0x25   :  { %779 = dma.done.wait [#allocation6], 4096  }
  0x26   :  { %780 = vsyncadd [#allocation6], 4294963200  ;;  %v790_v0 = vmov 0   ;;  %v62_v1 = vld [vmem:[%s859_s0] sm:$0xff]  ;;  %v650_v4 = vld [vmem:[#allocation5 + $0x64] ss:$8 sps:$4 sm:$0xff]  }
  0x27   :  { %646 = vset.pattern.permute.xlu0 %v790_v0  ;;  %310 = vmatprep.mubr.bf16.mxu0 %v790_v0  ;;  %v647_v2 = vld [vmem:[#allocation5 + $0x74] ss:$8 sps:$4 sm:$0xff]   ;;  %v649_v3 = vld [vmem:[#allocation5 + $0x70] ss:$8 sps:$4 sm:$0xff]   ;;  %v652_v5 = vld [vmem:[#allocation5 + $0x60] ss:$8 sps:$4 sm:$0xff]  }
  0x28   :  { %67 = vperm.xlu0 %646, %v62_v1   ;;  %278 = vmatprep.subr.bf16.mxu0 %v647_v2  ;;  %v653_v6 = vld [vmem:[#allocation5 + $0x54] ss:$8 sps:$4 sm:$0xff]   ;;  %v655_v7 = vld [vmem:[#allocation5 + $0x50] ss:$8 sps:$4 sm:$0xff]   ;;  %v656_v8 = vld [vmem:[#allocation5 + $0x44] ss:$8 sps:$4 sm:$0xff]  }
  0x29   :  { %279 = vmatpush1.bf16.msra.mxu0 %v649_v3  ;;  %v658_v9 = vld [vmem:[#allocation5 + $0x40] ss:$8 sps:$4 sm:$0xff]   ;;  %v659_v10 = vld [vmem:[#allocation5 + $0x34] ss:$8 sps:$4 sm:$0xff]   ;;  %v661_v11 = vld [vmem:[#allocation5 + $0x30] ss:$8 sps:$4 sm:$0xff]  }
  0x2a   :  { %280 = vmatprep.subr.bf16.mxu0 %v650_v4  ;;  %v662_v12 = vld [vmem:[#allocation5 + $0x24] ss:$8 sps:$4 sm:$0xff]   ;;  %v664_v13 = vld [vmem:[#allocation5 + $0x20] ss:$8 sps:$4 sm:$0xff]   ;;  %v665_v14 = vld [vmem:[#allocation5 + $0x14] ss:$8 sps:$4 sm:$0xff]  }
  0x2b   :  { %v667_v15 = vld [vmem:[#allocation5 + $0x10] ss:$8 sps:$4 sm:$0xff]   ;;  %v668_v16 = vld [vmem:[#allocation5 + $0x4] ss:$8 sps:$4 sm:$0xff]   ;;  %v670_v17 = vld [vmem:[#allocation5] ss:$8 sps:$4 sm:$0xff]  }
  0x2c   :  { %v63_v18 = vld [vmem:[#allocation2] ss:$0 sm:$0xff]  ;;  %v64_v19 = vld [vmem:[#allocation2 + $0x1] ss:$0 sm:$0xff]  ;;  %v791_v33 = vmov 683565275  }
  0x2d   :  { %281 = vmatpush1.bf16.msra.mxu0 %v652_v5  ;;  %v792_v35 = vmov 2475754826   ;;  %v793_v38 = vmov 2131351028   ;;  %v794_v41 = vmov 2102212464  }
  0x2e   :  { %282 = vmatprep.subr.bf16.mxu0 %v653_v6  ;;  %v795_v44 = vmov 920167782   ;;  %v796_v47 = vmov 1326507024   ;;  %s797_s0 = smov [#allocation8]  }
  0x2f   :  { %s559_s3 = sshll.u32 %s797_s0, 4  ;;  %s560_s3 = int_to_ptr.vmem [resolvable:$true] %s559_s3 }
  0x30   :  { %s757_s8 = scalar_lea.vmem %s560_s3, 128  ;;  %p762_p2 = scmp.lt.s32.totalorder %s560_s3, %s560_s3 }
  0x31   :  { %283 = vmatpush1.bf16.msra.mxu0 %v655_v7  ;;  %p758_p1 = scmp.ne.s32.totalorder %s560_s3, %s757_s8  ;;  %p763_p3 = scmp.lt.s32.totalorder %s757_s8, %s757_s8 }
  0x32   :  { %284 = vmatprep.subr.bf16.mxu0 %v656_v8 }
  0x33   :  { %p764_p4 = por %p763_p3, %p762_p2 }
  0x35   :  { %285 = vmatpush1.bf16.msra.mxu0 %v658_v9  ;;  %p765_p5 = pnand %p764_p4, %p758_p1 }
  0x36   :  { %286 = vmatprep.subr.bf16.mxu0 %v659_v10 }
  0x39   :  { %287 = vmatpush1.bf16.msra.mxu0 %v661_v11 }
  0x3a   :  { %288 = vmatprep.subr.bf16.mxu0 %v662_v12 }
  0x3d   :  { %289 = vmatpush1.bf16.msra.mxu0 %v664_v13 }
  0x3e   :  { %290 = vmatprep.subr.bf16.mxu0 %v665_v14 }
  0x41   :  { %291 = vmatpush1.bf16.msra.mxu0 %v667_v15 }
  0x42   :  { %292 = vmatprep.subr.bf16.mxu0 %v668_v16 }
  0x45   :  { %293 = vmatpush1.bf16.msra.mxu0 %v670_v17 }
  0xa3   :  { %v68_v20 = vpop.permute.xlu0 %67 }
  0xa4   :  { %v70_v21 = vmul.f32 %v68_v20, %v63_v18 }
  0xa6   :  { %v835_v22 = vadd.f32 %v70_v21, %v64_v19 }
  0xa8   :  { %v75_v23 = vand.u32 2139095040, %v835_v22  ;;  %v72_v27 = vand.u32 2147483647, %v835_v22  ;;  %vm74_vm7 = vcmp.lt.s32.totalorder %v835_v22, 0  ;;  %vm164_vm12 = vweird.f32 %v835_v22 }
  0xaa   :  { %v76_v24 = vshrl.u32 %v75_v23, 23  ;;  %v79_v30 = vand.u32 8388607, %v72_v27  ;;  %vm73_vm8 = vcmp.le.f32.partialorder %v72_v27, 0.7853982 }
  0xac   :  { %v569_v25 = vadd.s32 4294967169, %v76_v24  ;;  %v80_v49 = vor.u32 8388608, %v79_v30 }
  0xae   :  { %v82_v26 = vadd.s32 1, %v569_v25  ;;  %v120_v63 = vshll.u32 %v80_v49, 8 }
  0xb0   :  { %vm83_vm0 = vcmp.gt.s32.totalorder %v82_v26, 0 }
  0xb1   :  { %v84_v28 = vsel %vm83_vm0, %v82_v26, 0 }
  0xb2   :  { %v86_v29 = vand.u32 31, %v84_v28  ;;  %v85_v32 = vshrl.u32 %v84_v28, 5 }
  0xb4   :  { %v87_v31 = vsub.s32 32, %v86_v29  ;;  %v89_v34 = vshll.u32 %v791_v33, %v86_v29  ;;  %v92_v36 = vshll.u32 %v792_v35, %v86_v29  ;;  %v95_v40 = vshll.u32 %v793_v38, %v86_v29 }
  0xb5   :  { %v98_v43 = vshll.u32 %v794_v41, %v86_v29  ;;  %v101_v46 = vshll.u32 %v795_v44, %v86_v29  ;;  %vm104_vm1 = vcmp.lt.s32.totalorder %v85_v32, 1  ;;  %vm107_vm2 = vcmp.lt.s32.totalorder %v85_v32, 4 }
  0xb6   :  { %v90_v37 = vshrl.u32 %v792_v35, %v87_v31  ;;  %v93_v39 = vshrl.u32 %v793_v38, %v87_v31  ;;  %v96_v42 = vshrl.u32 %v794_v41, %v87_v31  ;;  %v99_v45 = vshrl.u32 %v795_v44, %v87_v31 }
  0xb7   :  { %v102_v48 = vshrl.u32 %v796_v47, %v87_v31  ;;  %v88_v58 = vshrl.u32 %v791_v33, %v87_v31  ;;  %vm106_vm3 = vcmp.lt.s32.totalorder %v85_v32, 3  ;;  %vm105_vm4 = vcmp.lt.s32.totalorder %v85_v32, 2 }
  0xb8   :  { %v91_v50 = vor.u32 %v90_v37, %v89_v34  ;;  %v94_v51 = vor.u32 %v93_v39, %v92_v36  ;;  %v97_v52 = vor.u32 %v96_v42, %v95_v40  ;;  %v100_v53 = vor.u32 %v99_v45, %v98_v43 }
  0xb9   :  { %v103_v54 = vor.u32 %v102_v48, %v101_v46 }
  0xba   :  { %v109_v55 = vsel %vm107_vm2, %v97_v52, 2102212464  ;;  %v112_v56 = vsel %vm104_vm1, %v91_v50, %v94_v51  ;;  %v116_v57 = vsel %vm104_vm1, %v94_v51, %v97_v52  ;;  %v113_v59 = vsel %vm107_vm2, %v100_v53, 920167782 }
  0xbb   :  { %v117_v60 = vsel %vm107_vm2, %v103_v54, 1326507024  ;;  %v114_v61 = vsel %vm106_vm3, %v97_v52, %v113_v59  ;;  %v108_v0 = vsel %vm104_vm1, %v88_v58, %v91_v50  ;;  %v110_v1 = vsel %vm106_vm3, %v94_v51, %v109_v55  ;;  %v671_v52 = vld [vmem:[#allocation7 + $0x78] sm:$0xff]   ;;  %v673_v54 = vld [vmem:[#allocation7 + $0x70] sm:$0xff]   ;;  %v677_v58 = vld [vmem:[#allocation7 + $0x60] sm:$0xff]  }
  0xbc   :  { %v118_v62 = vsel %vm106_vm3, %v100_v53, %v117_v60  ;;  %v115_v2 = vsel %vm105_vm4, %v112_v56, %v114_v61  ;;  %v111_v8 = vsel %vm105_vm4, %v108_v0, %v110_v1  ;;  %v672_v53 = vld [vmem:[#allocation7 + $0x38] sm:$0xff]   ;;  %605 = vmatprep.subr.bf16.mxu1 %v671_v52  ;;  %v674_v55 = vld [vmem:[#allocation7 + $0x30] sm:$0xff]   ;;  %v675_v56 = vld [vmem:[#allocation7 + $0x68] sm:$0xff]  }
  0xbd   :  { %v119_v3 = vsel %vm105_vm4, %v116_v57, %v118_v62  ;;  %v844_v6 = vmul.u32.u64.low %v120_v63, %v115_v2  ;;  %v845_v7 = vmul.u32.u64.high %v120_v63, %v115_v2, %v844_v6  ;;  %v127_v10 = vmul.u32 %v120_v63, %v111_v8  ;;  %606 = vmatpush3.bf16.msra.mxu1 %v672_v53  ;;  %v676_v57 = vld [vmem:[#allocation7 + $0x28] sm:$0xff]   ;;  %v678_v59 = vld [vmem:[#allocation7 + $0x20] sm:$0xff]   ;;  %v680_v60 = vld [vmem:[#allocation7 + $0x18] sm:$0xff]  }
  0xbe   :  { %v841_v4 = vmul.u32.u64.low %v120_v63, %v119_v3  ;;  %v842_v5 = vmul.u32.u64.high %v120_v63, %v119_v3, %v841_v4  ;;  %607 = vmatprep.subr.bf16.mxu1 %v673_v54  ;;  %v681_v61 = vld [vmem:[#allocation7 + $0x50] sm:$0xff]   ;;  %v683_v63 = vld [vmem:[#allocation7 + $0x48] sm:$0xff]   ;;  %v685_v1 = vld [vmem:[#allocation7 + $0x40] sm:$0xff]   ;;  %v322_v3 = vlaneseq }
  0xbf   :  { %v130_v9 = vadd.s32 1, %v845_v7  ;;  %v682_v62 = vld [vmem:[#allocation7 + $0x10] sm:$0xff]   ;;  %v684_v0 = vld [vmem:[#allocation7 + $0x8] sm:$0xff]   ;;  %v686_v2 = vld [vmem:[#allocation7] sm:$0xff]  }
  0xc0   :  { %vm129_vm5 = vc.u32 %v842_v5, %v844_v6  ;;  %v128_v23 = vadd.s32 %v844_v6, %v842_v5  ;;  %v323_v4 = vshrl.u32 %v322_v3, 7  ;;  %v177_v6 = vld [vmem:[#allocation2 + $0x2] ss:$8 sm:$0x3] }
  0xc1   :  { %v131_v11 = vsel %vm129_vm5, %v130_v9, %v845_v7  ;;  %608 = vmatpush3.bf16.msra.mxu1 %v674_v55 }
  0xc2   :  { %v132_v12 = vadd.s32 %v131_v11, %v127_v10  ;;  %609 = vmatprep.subr.bf16.mxu1 %v675_v56  ;;  %v324_v5 = vsub.s32 0, %v323_v4  ;;  %v328_v7 = vsub.s32 1, %v323_v4 }
  0xc4   :  { %v133_v13 = vadd.s32 536870912, %v132_v12  ;;  %v325_v8 = vrot.slane %v177_v6, %v324_v5  ;;  %v329_v9 = vrot.slane %v177_v6, %v328_v7 }
  0xc5   :  { %610 = vmatpush3.bf16.msra.mxu1 %v676_v57 }
  0xc6   :  { %v134_v14 = vshrl.u32 %v133_v13, 30  ;;  %611 = vmatprep.subr.bf16.mxu1 %v677_v58  ;;  %v332_v10 = vpack.c.bf16 %v325_v8, %v325_v8  ;;  %v333_v11 = vpack.c.bf16 %v329_v9, %v329_v9 }
  0xc8   :  { %v135_v15 = vshll.u32 %v134_v14, 30  ;;  %v158_v37 = vsub.s32 4, %v134_v14  ;;  %v342_v13 = vpack.i.b16 %v333_v11, %v333_v11 }
  0xc9   :  { %612 = vmatpush3.bf16.msra.mxu1 %v678_v59 }
  0xca   :  { %v136_v16 = vsub.s32 %v132_v12, %v135_v15  ;;  %v159_v40 = vsel %vm74_vm7, %v158_v37, %v134_v14  ;;  %v335_v12 = vpack.i.b16 %v332_v10, %v332_v10 }
  0xcb   :  { %v161_v41 = vsel %vm73_vm8, 0, %v159_v40 }
  0xcc   :  { %v138_v17 = vsub.s32 0, %v136_v16  ;;  %v165_v42 = vadd.s32 3, %v161_v41  ;;  %v340_v14 = vrot.slane %v335_v12, %v324_v5 }
  0xce   :  { %v570_v18 = vmin.u32 %v138_v17, %v136_v16  ;;  %v166_v43 = vand.u32 3, %v165_v42  ;;  %v347_v17 = vrot.slane %v342_v13, %v324_v5 }
  0xd0   :  { %v140_v19 = vclz %v570_v18  ;;  %vm171_vm9 = vcmp.eq.s32.totalorder %v166_v43, 2  ;;  %vm168_vm10 = vcmp.eq.s32.totalorder %v166_v43, 0  ;;  %vm167_vm11 = vcmp.lt.s32.totalorder %v166_v43, 2 }
  0xd2   :  { %v571_v20 = vadd.s32 4294967294, %v140_v19 }
  0xd4   :  { %vm572_vm6 = vcmp.lt.s32.totalorder %v571_v20, 0 }
  0xd5   :  { %v143_v21 = vsel %vm572_vm6, 0, %v571_v20 }
  0xd6   :  { %v144_v24 = vsub.s32 32, %v143_v21  ;;  %v148_v25 = vsub.s32 4294967266, %v143_v21  ;;  %v145_v26 = vshll.u32 %v136_v16, %v143_v21 }
  0xd8   :  { %v146_v28 = vshrl.u32 %v128_v23, %v144_v24  ;;  %v149_v29 = vadd.s32 127, %v148_v25 }
  0xda   :  { %v147_v30 = vor.u32 %v146_v28, %v145_v26  ;;  %v150_v31 = vshll.u32 %v149_v29, 23 }
  0xdc   :  { %v151_v32 = vor.u32 4788187, %v150_v31  ;;  %v154_v34 = vcvt.s32.f32 %v147_v30 }
  0xde   :  { %v152_v33 = vand.u32 2147483647, %v151_v32 }
  0xe0   :  { %v155_v35 = vmul.f32 %v154_v34, %v152_v33 }
  0xe2   :  { %v156_v36 = vxor.u32 2147483648, %v155_v35 }
  0xe4   :  { %v157_v38 = vsel %vm74_vm7, %v156_v36, %v155_v35 }
  0xe5   :  { %v160_v39 = vsel %vm73_vm8, %v835_v22, %v157_v38  ;;  %v679_v22 = vld [vmem:[#allocation7 + $0x58] sm:$0xff]  }
  0xe6   :  { %687 = vcosq.f32 %v160_v39  ;;  %613 = vmatprep.subr.bf16.mxu1 %v679_v22 }
  0xe7   :  { %689 = vsinq.f32 %v160_v39  ;;  %614 = vmatpush3.bf16.msra.mxu1 %v680_v60  ;;  %v179_v60 = vld [vmem:[#allocation2 + $0x4] ss:$0 sm:$0xff] }
  0xe8   :  { %615 = vmatprep.subr.bf16.mxu1 %v681_v61 }
  0xeb   :  { %616 = vmatpush3.bf16.msra.mxu1 %v682_v62  ;;  %v180_v62 = vld [vmem:[#allocation2 + $0x5] ss:$0 sm:$0xff] }
  0xec   :  { %617 = vmatprep.subr.bf16.mxu1 %v683_v63 }
  0xef   :  { %618 = vmatpush3.bf16.msra.mxu1 %v684_v0 }
  0xf0   :  { %619 = vmatprep.subr.bf16.mxu1 %v685_v1 }
  0xf3   :  { %v688_v44 = vpop.eup %687  ;;  %620 = vmatpush3.bf16.msra.mxu1 %v686_v2 }
  0xf4   :  { %v690_v45 = vpop.eup %689  ;;  %v172_v46 = vxor.u32 2147483648, %v688_v44 }
  0xf5   :  { %v169_v47 = vxor.u32 2147483648, %v690_v45 }
  0xf6   :  { %v173_v48 = vsel %vm171_vm9, %v172_v46, %v690_v45  ;;  %v178_v45 = vld [vmem:[#allocation2 + $0x3] ss:$0 sm:$0xff] }
  0xf7   :  { %v170_v49 = vsel %vm168_vm10, %v688_v44, %v169_v47 }
  0xf8   :  { %v174_v27 = vsel %vm167_vm11, %v170_v49, %v173_v48 }
  0xf9   :  { %v175_v50 = vsel %vm164_vm12, nan, %v174_v27 }
  0xfa   :  { %v181_v51 = vpack.c.bf16 %v175_v50, %v175_v50 }
  0xfc   :  { %311 = vmatmul.mubr.bf16.vlgmr.msra.gmra.mxu0 %v181_v51 }
 0x1bc   :  { %v312_v15 = vpop.f32.mrf.mxu0 }
 0x1bd   :  { %v319_v16 = vpack.c.bf16 %v312_v15, %v312_v15 }
 0x1be   :  { %v314_v18 = vpop.f32.mrf.mxu0 }
 0x1bf   :  { %v348_v19 = vadd.bf16 %v340_v14, %v319_v16  ;;  %v320_v20 = vpack.c.bf16 %v314_v18, %v314_v18 }
 0x1c0   :  { %v316_v21 = vpop.f32.mrf.mxu0 }
 0x1c1   :  { %v352_v23 = vmul.bf16 1027030327, %v348_v19  ;;  %v349_v24 = vadd.bf16 %v347_v17, %v320_v20  ;;  %v350_v41 = vmul.bf16 1056980736, %v348_v19 }
 0x1c2   :  { %v317_v25 = vpop.f32.mrf.mxu0 }
 0x1c3   :  { %v353_v26 = vmul.bf16 1027030327, %v349_v24  ;;  %v354_v28 = vmul.bf16 %v352_v23, %v348_v19  ;;  %v351_v39 = vmul.bf16 1056980736, %v349_v24 }
 0x1c5   :  { %v355_v29 = vmul.bf16 %v353_v26, %v349_v24  ;;  %v356_v30 = vmul.bf16 %v354_v28, %v348_v19 }
 0x1c7   :  { %v357_v31 = vmul.bf16 %v355_v29, %v349_v24  ;;  %v358_v32 = vadd.bf16 %v356_v30, %v348_v19 }
 0x1c9   :  { %v359_v33 = vadd.bf16 %v357_v31, %v349_v24  ;;  %v360_v34 = vmul.bf16 1061961548, %v358_v32 }
 0x1cb   :  { %v361_v35 = vmul.bf16 1061961548, %v359_v33  ;;  %691 = vtanh.bf16 %v360_v34 }
 0x1cd   :  { %693 = vtanh.bf16 %v361_v35 }
 0x1d9   :  { %v692_v36 = vpop.eup %691 }
 0x1da   :  { %v364_v38 = vadd.bf16 1065369472, %v692_v36 }
 0x1db   :  { %v694_v37 = vpop.eup %693 }
 0x1dc   :  { %v365_v40 = vadd.bf16 1065369472, %v694_v37  ;;  %v366_v43 = vmul.bf16 %v364_v38, %v350_v41 }
 0x1de   :  { %v367_v42 = vmul.bf16 %v365_v40, %v351_v39 }
 0x1e0   :  { %528 = vmatprep.mubr.bf16.mxu1 %v367_v42 }
 0x1e1   :  { %529 = vmatmul.mubr.bf16.vlgmr.msra.gmra.mxu1 %v366_v43 }
 0x2a1   :  { %v621_v44 = vpop.f32.mrf.mxu1 }
 0x2a3   :  { %v622_v46 = vpop.f32.mrf.mxu1 }
 0x2a4   :  { %v623_v47 = vadd.f32 %v622_v46, %v621_v44 }
 0x2a5   :  { %v624_v48 = vpop.f32.mrf.mxu1 }
 0x2a6   :  { %v531_v49 = vadd.f32 %v623_v47, %v178_v45 }
 0x2a7   :  { %v625_v27 = vpop.f32.mrf.mxu1 }
 0x2a8   :  { %536 = vadd.xlane.f32.xlu0 %v531_v49  ;;  %v538_v50 = vmul.f32 %v531_v49, %v531_v49 }
 0x2aa   :  { %539 = vadd.xlane.f32.xlu1 %v538_v50 }
 0x331   :  { %v537_v51 = vpop.xlane.xlu0 %536 }
 0x332   :  { %v541_v52 = vmul.f32 0.0078125, %v537_v51 }
 0x333   :  { %v540_v53 = vpop.xlane.xlu1 %539 }
 0x334   :  { %v543_v54 = vmul.f32 %v541_v52, %v541_v52  ;;  %v542_v55 = vmul.f32 0.0078125, %v540_v53  ;;  %v546_v59 = vsub.f32 %v531_v49, %v541_v52 }
 0x336   :  { %v544_v56 = vsub.f32 %v542_v55, %v543_v54 }
 0x338   :  { %v545_v57 = vmax.f32 %v544_v56, 0.0 }
 0x33a   :  { %v547_v58 = vadd.f32 1e-05, %v545_v57 }
 0x33c   :  { %695 = vrsqrt.f32 %v547_v58 }
 0x349   :  { %v696_v22 = vpop.eup %695 }
 0x34a   :  { %v549_v61 = vmul.f32 %v696_v22, %v546_v59 }
 0x34c   :  { %v550_v63 = vmul.f32 %v549_v61, %v179_v60 }
 0x34e   :  { %v551_v0 = vadd.f32 %v550_v63, %v180_v62 }
 0x350   :  { %552 = vst [vmem:[#allocation8] sm:$0xff] %v551_v0 }
 0x351   :  { %768 = shalt.err (!%p765_p5)
}
 0x352   :  { %562 = dma.vmem_to_hbm [thread:$0]  %s560_s3, 128, %s863_s4, [#allocation4]  }
 0x353   :  { %781 = dma.done.wait [#allocation4], 128  }
 0x354   :  { %782 = vsyncadd [#allocation4], 4294967168 }
 0x355   :  { %566 = vsyncpa [#allocation3], 1 }
 0x356   :  { %567 = vsyncpa [#allocation6], 1 }
 0x357   :  { %568 = vsyncpa [#allocation4], 1 }

</bundles_post_ra>
